<compile_context>
chip_gen: v5e
topology: v5e:2x2
jax: 0.10.0
libtpu: 0.0.40
codegen_flags: <defaults>
</compile_context>

<pallas_src>
import functools

import jax
import jax.numpy as jnp
from jax.experimental import pallas as pl
from jax.experimental.pallas import tpu as pltpu

HIDDEN = 128
LANE = 128


def _round_up(x, m):
    return ((x + m - 1) // m) * m


def _cdiv(a, b):
    return -(-a // b)


def _choose_tile(B, tm_max):
    """Pick (tm, n_tiles): tm is a multiple of 8 (sublane), the grid has an
    even number (>=2) of steps so both v7x TensorCores get balanced work, and
    the last tile is nearly full (padding waste stays small)."""
    tm_max = max(8, _round_up(tm_max, 8))
    n_tiles = max(2, _cdiv(B, tm_max))
    if n_tiles % 2:
        n_tiles += 1
    tm = max(8, _round_up(_cdiv(B, n_tiles), 8))
    return tm, n_tiles


def dqn_kernel(x_ref, w1_ref, b1_ref, w2_ref, b2_ref, w3_ref, b3_ref, o_ref,
               *, n_actions, compute_dtype):
    # One batch tile per grid step; weights/biases stay resident in VMEM across
    # the whole grid (constant index_map).  Three MXU matmuls with f32
    # accumulation; operands in compute_dtype (bf16 by default); bias add and
    # ReLU in f32 on the VPU.
    x = x_ref[...].astype(compute_dtype)
    h1 = jnp.dot(x, w1_ref[...], preferred_element_type=jnp.float32) + b1_ref[...]
    h1 = jnp.maximum(h1, 0.0)
    h2 = jnp.dot(h1.astype(compute_dtype), w2_ref[...],
                 preferred_element_type=jnp.float32) + b2_ref[...]
    h2 = jnp.maximum(h2, 0.0)
    out = jnp.dot(h2.astype(compute_dtype), w3_ref[...],
                  preferred_element_type=jnp.float32) + b3_ref[...]
    # Lane-padded compute tile, but only the real action columns go to HBM.
    # TODO(synk): option (b) from the review (packing 128//n_actions batch rows
    # per 128-lane output row for fully unmasked vst) is possible but the DMA
    # traffic win is already captured by this sliced store.
    o_ref[...] = out[:, :n_actions].astype(o_ref.dtype)


def dqn_forward(x, params, *, tm_max=1024, compute_dtype=jnp.bfloat16):
    """x: (B, n_obs) f32. params: dict with w1,b1,w2,b2,w3,b3 (f32 JAX arrays)."""
    w1, b1 = params["w1"], params["b1"]
    w2, b2 = params["w2"], params["b2"]
    w3, b3 = params["w3"], params["b3"]

    B, n_obs = x.shape
    n_actions = w3.shape[1]

    # Lane-dense compute for the last layer: pad its columns up to a multiple
    # of 128 lanes (padding columns are computed but never written back).
    n_out_p = _round_up(max(n_actions, LANE), LANE)
    if n_out_p != n_actions:
        w3 = jnp.pad(w3, ((0, 0), (0, n_out_p - n_actions)))
        b3 = jnp.pad(b3, ((0, 0), (0, n_out_p - n_actions)))

    # bf16 matmul operands (in a real training loop the weights would simply
    # be kept in bf16 outside this call).  Biases stay f32.
    w1 = w1.astype(compute_dtype)
    w2 = w2.astype(compute_dtype)
    w3 = w3.astype(compute_dtype)

    tm, n_tiles = _choose_tile(B, tm_max)
    B_p = tm * n_tiles
    if B_p != B:
        x = jnp.pad(x, ((0, B_p - B), (0, 0)))

    grid = (n_tiles,)

    f32 = 4
    w_isz = jnp.dtype(compute_dtype).itemsize
    # VMEM footprint: Pallas allocates 2 buffers per input spec even when the
    # index_map is constant, so weights/biases are counted twice too.
    footprint = (
        2 * tm * n_obs * f32                                   # x tile (2 bufs)
        + 2 * tm * n_actions * f32                             # out tile (2 bufs)
        + 4 * tm * HIDDEN * f32                                # h1/h2/out intermediates (+ casts)
        + 2 * (n_obs * HIDDEN + HIDDEN * HIDDEN + HIDDEN * n_out_p) * w_isz
        + 2 * (2 * HIDDEN + n_out_p) * f32                     # biases (2 bufs)
    )
    vmem_limit = int(min(32 << 20, max(4 << 20, 2 * footprint)))

    flops = 2 * B_p * (n_obs * HIDDEN + HIDDEN * HIDDEN + HIDDEN * n_out_p)
    bytes_accessed = (
        B_p * n_obs * f32
        + B_p * n_actions * f32
        + (n_obs * HIDDEN + HIDDEN * HIDDEN + HIDDEN * n_out_p) * w_isz
        + (2 * HIDDEN + n_out_p) * f32
    )

    resident = lambda shape: pl.BlockSpec(shape, lambda i: (0, 0))
    kernel = functools.partial(dqn_kernel, n_actions=n_actions,
                               compute_dtype=compute_dtype)

    out_p = pl.pallas_call(
        kernel,
        out_shape=jax.ShapeDtypeStruct((B_p, n_actions), jnp.float32),
        grid=grid,
        in_specs=[
            pl.BlockSpec((tm, n_obs), lambda i: (i, 0)),
            resident(w1.shape), resident(b1.shape),
            resident(w2.shape), resident(b2.shape),
            resident(w3.shape), resident(b3.shape),
        ],
        out_specs=pl.BlockSpec((tm, n_actions), lambda i: (i, 0)),
        compiler_params=pltpu.CompilerParams(
            dimension_semantics=("parallel",),   # batch tiles shard across both TCs
            vmem_limit_bytes=vmem_limit,
        ),
        cost_estimate=pl.CostEstimate(
            flops=flops, transcendentals=0, bytes_accessed=bytes_accessed
        ),
    )(x, w1, b1, w2, b2, w3, b3)

    return out_p[:B]


def init_dqn_params(key, n_observations, n_actions, hidden=HIDDEN):
    """Deterministic PyTorch-style init: U(-1/sqrt(fan_in), 1/sqrt(fan_in))."""
    keys = jax.random.split(key, 6)

    def layer(kw, kb, fan_in, fan_out):
        bound = 1.0 / jnp.sqrt(jnp.float32(fan_in))
        w = jax.random.uniform(kw, (fan_in, fan_out), jnp.float32, -bound, bound)
        b = jax.random.uniform(kb, (1, fan_out), jnp.float32, -bound, bound)
        return w, b

    w1, b1 = layer(keys[0], keys[1], n_observations, hidden)
    w2, b2 = layer(keys[2], keys[3], hidden, hidden)
    w3, b3 = layer(keys[4], keys[5], hidden, n_actions)
    return {"w1": w1, "b1": b1, "w2": w2, "b2": b2, "w3": w3, "b3": b3}


def dqn_reference(x, p):
    h1 = jnp.maximum(x @ p["w1"] + p["b1"], 0.0)
    h2 = jnp.maximum(h1 @ p["w2"] + p["b2"], 0.0)
    return h2 @ p["w3"] + p["b3"]


if __name__ == "__main__":
    key = jax.random.PRNGKey(0)
    k_param, k_x, k_x2 = jax.random.split(key, 3)

    n_observations, n_actions = 8, 4
    params = init_dqn_params(k_param, n_observations, n_actions)

    # Small sanity-check batch (matches the original toy shapes).
    B = 2
    x = jax.random.normal(k_x, (B, n_observations), jnp.float32)
    ref = dqn_reference(x, params)

    # f32-operand path: matches the f32 PyTorch-style reference tightly.
    out_f32 = jax.block_until_ready(
        dqn_forward(x, params, compute_dtype=jnp.float32))
    assert out_f32.shape == (B, n_actions), out_f32.shape
    assert jnp.allclose(out_f32, ref, atol=1e-5, rtol=1e-5), \
        "mismatch vs. reference (f32 path)"

    # Default bf16-operand / f32-accumulate path: small numerical deviation.
    out_bf16 = jax.block_until_ready(dqn_forward(x, params))
    assert out_bf16.shape == (B, n_actions), out_bf16.shape
    assert jnp.allclose(out_bf16, ref, atol=2e-2, rtol=2e-2), \
        "mismatch vs. reference (bf16 path)"

    # Exercise the multi-tile grid + padding path (non-multiple-of-tile batch).
    B2 = 300
    x2 = jax.random.normal(k_x2, (B2, n_observations), jnp.float32)
    ref2 = dqn_reference(x2, params)
    out2 = jax.block_until_ready(dqn_forward(x2, params, tm_max=128))
    assert out2.shape == (B2, n_actions), out2.shape
    assert jnp.allclose(out2, ref2, atol=2e-2, rtol=2e-2), \
        "mismatch vs. reference (B=300)"

    print("KERNEL_OK")
</pallas_src>

<mosaic_0001>
module attributes {stable_mosaic.version = 11 : i64} {
  func.func @dqn_kernel(%arg0: i32, %arg1: memref<8x8xf32, #tpu.memory_space<vmem>>, %arg2: memref<8x128xf32, #tpu.memory_space<vmem>>, %arg3: memref<1x128xf32, #tpu.memory_space<vmem>>, %arg4: memref<128x128xf32, #tpu.memory_space<vmem>>, %arg5: memref<1x128xf32, #tpu.memory_space<vmem>>, %arg6: memref<128x128xf32, #tpu.memory_space<vmem>>, %arg7: memref<1x128xf32, #tpu.memory_space<vmem>>, %arg8: memref<8x4xf32, #tpu.memory_space<vmem>>) attributes {dimension_semantics = [#tpu.dimension_semantics<parallel>], iteration_bounds = array<i64: 2>, scalar_prefetch = 0 : i64, scratch_operands = 0 : i64, tpu.core_type = #tpu.core_type<tc>, window_params = [{transform_indices = @transform_0, window_bounds = array<i64: 8, 8>}, {pipeline_mode = #tpu.pipeline_mode<synchronous>, transform_indices = @transform_1, window_bounds = array<i64: 8, 128>}, {pipeline_mode = #tpu.pipeline_mode<synchronous>, transform_indices = @transform_2, window_bounds = array<i64: 1, 128>}, {pipeline_mode = #tpu.pipeline_mode<synchronous>, transform_indices = @transform_3, window_bounds = array<i64: 128, 128>}, {pipeline_mode = #tpu.pipeline_mode<synchronous>, transform_indices = @transform_4, window_bounds = array<i64: 1, 128>}, {pipeline_mode = #tpu.pipeline_mode<synchronous>, transform_indices = @transform_5, window_bounds = array<i64: 128, 128>}, {pipeline_mode = #tpu.pipeline_mode<synchronous>, transform_indices = @transform_6, window_bounds = array<i64: 1, 128>}, {transform_indices = @transform_7, window_bounds = array<i64: 8, 4>}]} {
    %c0 = arith.constant 0 : index
    %c0_0 = arith.constant 0 : index
    %0 = vector.load %arg1[%c0, %c0_0] : memref<8x8xf32, #tpu.memory_space<vmem>>, vector<8x8xf32>
    %c0_1 = arith.constant 0 : index
    %c0_2 = arith.constant 0 : index
    %1 = vector.load %arg2[%c0_1, %c0_2] : memref<8x128xf32, #tpu.memory_space<vmem>>, vector<8x128xf32>
    %cst = arith.constant dense<0.000000e+00> : vector<8x128xf32>
    %2 = tpu.matmul %0, %1, %cst {dimension_numbers = #tpu.dot_dimension_numbers<[1], [0], [0], [1], [0, 0, 1, 1], [], []>} : vector<8x8xf32>, vector<8x128xf32>, vector<8x128xf32> -> vector<8x128xf32>
    %c0_3 = arith.constant 0 : index
    %c0_4 = arith.constant 0 : index
    %3 = vector.load %arg3[%c0_3, %c0_4] : memref<1x128xf32, #tpu.memory_space<vmem>>, vector<1x128xf32>
    %4 = vector.broadcast %3 : vector<1x128xf32> to vector<8x128xf32>
    %5 = arith.addf %2, %4 : vector<8x128xf32>
    %cst_5 = arith.constant 0.000000e+00 : f32
    %6 = vector.broadcast %cst_5 : f32 to vector<8x128xf32>
    %7 = arith.maximumf %5, %6 : vector<8x128xf32>
    %c0_6 = arith.constant 0 : index
    %c0_7 = arith.constant 0 : index
    %8 = vector.load %arg4[%c0_6, %c0_7] : memref<128x128xf32, #tpu.memory_space<vmem>>, vector<128x128xf32>
    %cst_8 = arith.constant dense<0.000000e+00> : vector<8x128xf32>
    %9 = tpu.matmul %7, %8, %cst_8 {dimension_numbers = #tpu.dot_dimension_numbers<[1], [0], [0], [1], [0, 0, 1, 1], [], []>} : vector<8x128xf32>, vector<128x128xf32>, vector<8x128xf32> -> vector<8x128xf32>
    %c0_9 = arith.constant 0 : index
    %c0_10 = arith.constant 0 : index
    %10 = vector.load %arg5[%c0_9, %c0_10] : memref<1x128xf32, #tpu.memory_space<vmem>>, vector<1x128xf32>
    %11 = vector.broadcast %10 : vector<1x128xf32> to vector<8x128xf32>
    %12 = arith.addf %9, %11 : vector<8x128xf32>
    %cst_11 = arith.constant 0.000000e+00 : f32
    %13 = vector.broadcast %cst_11 : f32 to vector<8x128xf32>
    %14 = arith.maximumf %12, %13 : vector<8x128xf32>
    %c0_12 = arith.constant 0 : index
    %c0_13 = arith.constant 0 : index
    %15 = vector.load %arg6[%c0_12, %c0_13] : memref<128x128xf32, #tpu.memory_space<vmem>>, vector<128x128xf32>
    %cst_14 = arith.constant dense<0.000000e+00> : vector<8x128xf32>
    %16 = tpu.matmul %14, %15, %cst_14 {dimension_numbers = #tpu.dot_dimension_numbers<[1], [0], [0], [1], [0, 0, 1, 1], [], []>} : vector<8x128xf32>, vector<128x128xf32>, vector<8x128xf32> -> vector<8x128xf32>
    %c0_15 = arith.constant 0 : index
    %c0_16 = arith.constant 0 : index
    %17 = vector.load %arg7[%c0_15, %c0_16] : memref<1x128xf32, #tpu.memory_space<vmem>>, vector<1x128xf32>
    %18 = vector.broadcast %17 : vector<1x128xf32> to vector<8x128xf32>
    %19 = arith.addf %16, %18 : vector<8x128xf32>
    %20 = vector.extract_strided_slice %19 {offsets = [0, 0], sizes = [8, 4], strides = [1, 1]} : vector<8x128xf32> to vector<8x4xf32>
    %c0_17 = arith.constant 0 : index
    %c0_18 = arith.constant 0 : index
    %21 = vector.load %arg8[%c0_17, %c0_18] : memref<8x4xf32, #tpu.memory_space<vmem>>, vector<8x4xf32>
    tpu.vector_store %arg8[%c0_17, %c0_18], %20 {strides = array<i32>} : memref<8x4xf32, #tpu.memory_space<vmem>>, vector<8x4xf32>,
    return
  }
  func.func @transform_0(%arg0: i32) -> (i32, i32) {
    %c0_i32 = arith.constant 0 : i32
    %c0_i32_0 = arith.constant 0 : i32
    return %arg0, %c0_i32 : i32, i32
  }
  func.func @transform_1(%arg0: i32) -> (i32, i32) {
    %c0_i32 = arith.constant 0 : i32
    %c0_i32_0 = arith.constant 0 : i32
    %c0_i32_1 = arith.constant 0 : i32
    return %c0_i32, %c0_i32_0 : i32, i32
  }
  func.func @transform_2(%arg0: i32) -> (i32, i32) {
    %c0_i32 = arith.constant 0 : i32
    %c0_i32_0 = arith.constant 0 : i32
    %c0_i32_1 = arith.constant 0 : i32
    return %c0_i32, %c0_i32_0 : i32, i32
  }
  func.func @transform_3(%arg0: i32) -> (i32, i32) {
    %c0_i32 = arith.constant 0 : i32
    %c0_i32_0 = arith.constant 0 : i32
    %c0_i32_1 = arith.constant 0 : i32
    return %c0_i32, %c0_i32_0 : i32, i32
  }
  func.func @transform_4(%arg0: i32) -> (i32, i32) {
    %c0_i32 = arith.constant 0 : i32
    %c0_i32_0 = arith.constant 0 : i32
    %c0_i32_1 = arith.constant 0 : i32
    return %c0_i32, %c0_i32_0 : i32, i32
  }
  func.func @transform_5(%arg0: i32) -> (i32, i32) {
    %c0_i32 = arith.constant 0 : i32
    %c0_i32_0 = arith.constant 0 : i32
    %c0_i32_1 = arith.constant 0 : i32
    return %c0_i32, %c0_i32_0 : i32, i32
  }
  func.func @transform_6(%arg0: i32) -> (i32, i32) {
    %c0_i32 = arith.constant 0 : i32
    %c0_i32_0 = arith.constant 0 : i32
    %c0_i32_1 = arith.constant 0 : i32
    return %c0_i32, %c0_i32_0 : i32, i32
  }
  func.func @transform_7(%arg0: i32) -> (i32, i32) {
    %c0_i32 = arith.constant 0 : i32
    %c0_i32_0 = arith.constant 0 : i32
    return %arg0, %c0_i32 : i32, i32
  }
}

</mosaic_0001>

<bundles_post_ra>
// kernel: tpu_custom_call.1
= control target key start
LH: loop header
LB: loop body
LE: loop exit
PB: predicated region body
PF: predicated region fallthrough
CT: control target
= control target key end

     0   :  { %12 = vsyncpa [#allocation3], 0  ;;  %s720_s0 = inlined_call_operand.vmem [shape: f32[16,8], index: 0, kind: input, shape index: {}]   ;;  %s721_s1 = inlined_call_operand.vmem [shape: f32[8,128], index: 1, kind: input, shape index: {}]   ;;  %s722_s2 = inlined_call_operand.vmem [shape: f32[1,128], index: 2, kind: input, shape index: {}]   ;;  %s723_s3 = inlined_call_operand.hbm [shape: f32[128,128], index: 3, kind: input, shape index: {}]   ;;  %s724_s4 = inlined_call_operand.vmem [shape: f32[1,128], index: 4, kind: input, shape index: {}]   ;;  %s725_s5 = inlined_call_operand.hbm [shape: f32[128,128], index: 5, kind: input, shape index: {}]   ;;  %s726_s6 = inlined_call_operand.vmem [shape: f32[1,128], index: 6, kind: input, shape index: {}]   ;;  %s727_s7 = inlined_call_operand.vmem [shape: f32[16,4], index: 7, kind: output, shape index: {}]  }
   0x1   :  { %13 = vsyncpa [#allocation5], 0  ;;  %s665_s24 = smov 0  }
   0x2 LB: > { %s219_s27 = sshll.u32 %s723_s3, 4  ;;  %s497_s28 = sadd.s32 4294967295, %s619_s24   ;;  %s619_s24 = sphi %s665_s24, %s19_s24   ;;  %s220_s27 = int_to_ptr.hbm [resolvable:$true] %s219_s27 }
   0x3   : > { %p499_p0 = scmp.ge.s32.totalorder %s619_s24, 1  ;;  %p202_p1 = scmp.lt.s32.totalorder %s619_s24, 3 }
   0x4   : > { %p526_p2 = scmp.eq.s32.totalorder %s497_s28, 0  ;;  %s621_s30 = smov [#allocation2]  }
   0x5   : > { %p676_p3 = pnand %p499_p0, %p202_p1  ;;  %s221_s8 = sshll.u32 %s621_s30, 4  ;;  %s222_s8 = int_to_ptr.vmem [resolvable:$true] %s221_s8 }
   0x6   : > { %s236_s11 = sshll.u32 %s725_s5, 4  ;;  %s622_s12 = smov [#allocation4]   ;;  %s237_s11 = int_to_ptr.hbm [resolvable:$true] %s236_s11 }
   0x7   : > { %p519_p4 = pneg %p676_p3  ;;  %s238_s13 = sshll.u32 %s622_s12, 4  ;;  %s239_s13 = int_to_ptr.vmem [resolvable:$true] %s238_s13 }
   0x8   : > { %s623_s14 = smov 128   ;;  %s624_s15 = smov 8  }
   0x9   : > { %p520_p5 = pnand %p526_p2, %p519_p4  ;;  %264 = sbr.rel (%p676_p3) target bundleno = 418 (0x1a2), region = 48 }
   0xb   : > { %522 = dma.hbm_to_vmem [thread:$0]  (!%p520_p5), %s220_s27, 2048, %s222_s8, [#allocation3], %s623_s14, %s623_s14, %s624_s15  }
   0xc   : > { %525 = dma.hbm_to_vmem [thread:$0]  (!%p520_p5), %s237_s11, 2048, %s239_s13, [#allocation5], %s623_s14, %s623_s14, %s624_s15  }
   0xe   : > { %610 = dma.done.wait (%p526_p2), [#allocation3], 2048  }
   0xf   : > { %612 = vsyncadd (%p526_p2), [#allocation3], 4294965248 }
  0x10   : > { %614 = dma.done.wait (%p526_p2), [#allocation5], 2048  }
  0x11   : > { %616 = vsyncadd (%p526_p2), [#allocation5], 4294965248  ;;  %p300_p6 = scmp.lt.s32.totalorder %s497_s28, 1  ;;  %vm314_vm0 = vcmask 64512   ;;  %v309_v0 = vld [vmem:[%s721_s1] sm:$0xff]  ;;  %v354_v2 = vld [vmem:[#allocation2 + $0x78] sm:$0xff] }
  0x12   : > { %333 = vmatpush.msra.mxu0 %v309_v0  ;;  %359 = vmatpush.msra.mxu1 %v354_v2  ;;  %v353_v3 = vld [vmem:[#allocation2 + $0x70] sm:$0xff]  ;;  %v352_v4 = vld [vmem:[#allocation2 + $0x68] sm:$0xff]  ;;  %v351_v5 = vld [vmem:[#allocation2 + $0x60] sm:$0xff]  ;;  %vm420_vm1 = vcmask 31744  }
  0x13   : > { %s730_s28 = smov (!%p300_p6, %s497_s28), 1  ;;  %v350_v6 = vld [vmem:[#allocation2 + $0x58] sm:$0xff]  ;;  %v349_v7 = vld [vmem:[#allocation2 + $0x50] sm:$0xff]  ;;  %v348_v8 = vld [vmem:[#allocation2 + $0x48] sm:$0xff] }
  0x14   : > { %s506_s16 = sshll.u32 %s730_s28, 3  ;;  %360 = vmatpush.msra.mxu1 %v353_v3  ;;  %v347_v9 = vld [vmem:[#allocation2 + $0x40] sm:$0xff]  ;;  %v346_v10 = vld [vmem:[#allocation2 + $0x38] sm:$0xff]  ;;  %v345_v11 = vld [vmem:[#allocation2 + $0x30] sm:$0xff] }
  0x15   : > { %s303_s19 = scalar_lea.vmem %s720_s0, %s506_s16  ;;  %v344_v12 = vld [vmem:[#allocation2 + $0x28] sm:$0xff]  ;;  %v343_v13 = vld [vmem:[#allocation2 + $0x20] sm:$0xff]  ;;  %v342_v14 = vld [vmem:[#allocation2 + $0x18] sm:$0xff]  ;;  %s307_s9 = scalar_lea.vmem %s727_s7, %s506_s16 }
  0x16   : > { %v308_v1 = vld [vmem:[%s303_s19] sm:$0xff]  ;;  %361 = vmatpush.msra.mxu1 %v352_v4  ;;  %v341_v15 = vld [vmem:[#allocation2 + $0x10] sm:$0xff]  ;;  %v340_v16 = vld [vmem:[#allocation2 + $0x8] sm:$0xff] }
  0x17   : > { %508 = vmatmul.msk.f32.vlgmr.msra.gmra.mxu0 %vm314_vm0, %v308_v1  ;;  %v339_v17 = vld [vmem:[#allocation2] sm:$0xff]  ;;  %v395_v18 = vld [vmem:[#allocation4 + $0x78] sm:$0xff]  ;;  %v394_v19 = vld [vmem:[#allocation4 + $0x70] sm:$0xff] }
  0x18   : > { %362 = vmatpush.msra.mxu1 %v351_v5  ;;  %400 = vmatpush.msra.mxu2 %v395_v18  ;;  %v393_v20 = vld [vmem:[#allocation4 + $0x68] sm:$0xff]  ;;  %v392_v21 = vld [vmem:[#allocation4 + $0x60] sm:$0xff]  ;;  %v391_v22 = vld [vmem:[#allocation4 + $0x58] sm:$0xff] }
  0x19   : > { %v390_v23 = vld [vmem:[#allocation4 + $0x50] sm:$0xff]  ;;  %v389_v24 = vld [vmem:[#allocation4 + $0x48] sm:$0xff]  ;;  %v388_v25 = vld [vmem:[#allocation4 + $0x40] sm:$0xff] }
  0x1a   : > { %363 = vmatpush.msra.mxu1 %v350_v6  ;;  %401 = vmatpush.msra.mxu2 %v394_v19  ;;  %v387_v26 = vld [vmem:[#allocation4 + $0x38] sm:$0xff]  ;;  %v386_v27 = vld [vmem:[#allocation4 + $0x30] sm:$0xff]  ;;  %v385_v28 = vld [vmem:[#allocation4 + $0x28] sm:$0xff] }
  0x1b   : > { %v384_v29 = vld [vmem:[#allocation4 + $0x20] sm:$0xff]  ;;  %v383_v30 = vld [vmem:[#allocation4 + $0x18] sm:$0xff]  ;;  %v382_v35 = vld [vmem:[#allocation4 + $0x10] sm:$0xff] }
  0x1c   : > { %364 = vmatpush.msra.mxu1 %v349_v7  ;;  %402 = vmatpush.msra.mxu2 %v393_v20  ;;  %v542_v31 = vld [vmem:[%s722_s2] ss:$0 sm:$0xff]  ;;  %v381_v36 = vld [vmem:[#allocation4 + $0x8] sm:$0xff] }
  0x1d   : > { %v380_v37 = vld [vmem:[#allocation4] sm:$0xff] }
  0x1e   : > { %365 = vmatpush.msra.mxu1 %v348_v8  ;;  %403 = vmatpush.msra.mxu2 %v392_v21  ;;  %v543_v38 = vld [vmem:[%s724_s4] ss:$0 sm:$0xff] }
  0x1f   : > { %v544_v42 = vld [vmem:[%s726_s6] ss:$0 sm:$0xff] }
  0x20   : > { %366 = vmatpush.msra.mxu1 %v347_v9  ;;  %404 = vmatpush.msra.mxu2 %v391_v22 }
  0x22   : > { %367 = vmatpush.msra.mxu1 %v346_v10  ;;  %405 = vmatpush.msra.mxu2 %v390_v23 }
  0x24   : > { %368 = vmatpush.msra.mxu1 %v345_v11  ;;  %406 = vmatpush.msra.mxu2 %v389_v24 }
  0x26   : > { %369 = vmatpush.msra.mxu1 %v344_v12  ;;  %407 = vmatpush.msra.mxu2 %v388_v25 }
  0x28   : > { %370 = vmatpush.msra.mxu1 %v343_v13  ;;  %408 = vmatpush.msra.mxu2 %v387_v26 }
  0x2a   : > { %371 = vmatpush.msra.mxu1 %v342_v14  ;;  %409 = vmatpush.msra.mxu2 %v386_v27 }
  0x2c   : > { %372 = vmatpush.msra.mxu1 %v341_v15  ;;  %410 = vmatpush.msra.mxu2 %v385_v28 }
  0x2e   : > { %373 = vmatpush.msra.mxu1 %v340_v16  ;;  %411 = vmatpush.msra.mxu2 %v384_v29 }
  0x30   : > { %374 = vmatpush.msra.mxu1 %v339_v17  ;;  %412 = vmatpush.msra.mxu2 %v383_v30 }
  0x32   : > { %413 = vmatpush.msra.mxu2 %v382_v35 }
  0x34   : > { %414 = vmatpush.msra.mxu2 %v381_v36 }
  0x36   : > { %415 = vmatpush.msra.mxu2 %v380_v37 }
  0x94   : > { %v335_v32 = vpop.f32.mrf.mxu0 }
  0x95   : > { %v336_v33 = vadd.f32 %v542_v31, %v335_v32 }
  0x97   : > { %v338_v34 = vmax.f32 %v336_v33, 0.0 }
  0x99   : > { %375 = vmatmul.f32.vlgmr.msra.gmra.mxu1 %v338_v34 }
 0x116   : > { %v376_v39 = vpop.f32.mrf.mxu1 }
 0x117   : > { %v377_v40 = vadd.f32 %v543_v38, %v376_v39 }
 0x119   : > { %v379_v41 = vmax.f32 %v377_v40, 0.0 }
 0x11b   : > { %416 = vmatmul.f32.vlgmr.msra.gmra.mxu2 %v379_v41 }
 0x19e   : > { %v417_v43 = vpop.f32.mrf.mxu2 }
 0x19f   : > { %v418_v44 = vadd.f32 %v544_v42, %v417_v43 }
 0x1a1   : > { %421 = vst.msk [vmem:[%s307_s9] sm:$0xff] %vm420_vm1, %v418_v44 }
 0x1a2 PF: > { %s19_s24 = sadd.s32 1, %s619_s24  }
 0x1a3   : > { %p16_p7 = scmp.ge.s32.totalorder %s19_s24, 4  }
 0x1a5   :  { %18 = sbr.rel (!%p16_p7) target bundleno = 2 (0x2), region = 87 }
 0x1aa   :  { %441 = vsyncpa [#allocation3], 1 }
 0x1ab   :  { %443 = vsyncpa [#allocation3 + $0x1], 1 }
 0x1ac   :  { %444 = vsyncpa [#allocation5], 1 }

</bundles_post_ra>
